<compile_context>
chip_gen: v7x
topology: tpu7x:2x2x1
jax: 0.10.0
libtpu: 0.0.40
codegen_flags: <defaults>
</compile_context>

<pallas_src>
import functools

import jax
import jax.numpy as jnp
from jax import lax
from jax.experimental import pallas as pl
from jax.experimental.pallas import tpu as pltpu

_MARGIN = 1.0
_EPS = 1e-6  # PyTorch F.pairwise_distance default eps


def _round_up(x, m):
    return ((x + m - 1) // m) * m


def _pair_groups(num_views):
    """Anchor-major pair groups [(anchor, [positives...]), ...]."""
    groups = [(i, list(range(i + 1, num_views))) for i in range(num_views - 1)]
    if not groups:  # degenerate single-view case: triplet(e0, e0, negative)
        groups = [(0, [0])]
    return groups


def _multi_view_kernel(emb_ref, neg_ref, out_ref, *,
                       groups, n_total, tile_n, out_lanes, needs_mask):
    """One grid step = one batch tile of ALL views.

    emb_ref : (V, tile_n, D)  -- every view's batch tile, DMA'd exactly once
    neg_ref : (tile_n, D)     -- shared negative tile
    out_ref : (1, 1, out_lanes) -- per-pair hinge sums for this tile (lane-dense)
    """
    neg = neg_ref[...]
    if neg.dtype != jnp.float32:
        neg = neg.astype(jnp.float32)

    if needs_mask:
        row = (pl.program_id(0) * tile_n
               + lax.broadcasted_iota(jnp.int32, (tile_n, 1), 0))
        valid = row < n_total                                   # (tile_n, 1)

    lane = lax.broadcasted_iota(jnp.int32, (1, out_lanes), 1)
    acc = jnp.zeros((1, out_lanes), jnp.float32)

    pair_idx = 0
    for anchor, positives in groups:                 # static, anchor-major
        a = emb_ref[anchor]                          # (tile_n, D)
        if a.dtype != jnp.float32:
            a = a.astype(jnp.float32)
        # anchor -> negative distance: computed ONCE per anchor.
        d_an = jnp.sqrt(jnp.sum((a - neg + _EPS) ** 2, axis=-1, keepdims=True))
        for pos in positives:
            p = emb_ref[pos]                         # (tile_n, D)
            if p.dtype != jnp.float32:
                p = p.astype(jnp.float32)
            d_ap = jnp.sqrt(jnp.sum((a - p + _EPS) ** 2, axis=-1, keepdims=True))
            hinge = jnp.maximum(d_ap - d_an + _MARGIN, 0.0)     # (tile_n, 1)
            if needs_mask:
                hinge = jnp.where(valid, hinge, 0.0)
            acc = acc + jnp.where(lane == pair_idx, jnp.sum(hinge), 0.0)
            pair_idx += 1

    out_ref[...] = acc.reshape(1, 1, out_lanes)


@functools.partial(jax.jit, static_argnames=("block_n",))
def multi_view_similarity_loss(embeddings, negative, block_n=None):
    """embeddings: (V, N, D), negative: (N, D) -> scalar f32 loss."""
    V, N, D = embeddings.shape
    groups = _pair_groups(V)
    num_pairs = sum(len(ps) for _, ps in groups)
    out_lanes = max(128, _round_up(num_pairs, 128))

    bpe = jnp.dtype(embeddings.dtype).itemsize
    if block_n is None:
        # Keep the double-buffered (V views + negative) working set well under
        # the scoped-VMEM defaults (16 MiB v5e / 32 MiB v6e, v7x).
        budget = 20 * 1024 * 1024
        tn = max(8, (budget // (2 * (V + 1) * D * bpe)) // 8 * 8)
    else:
        tn = block_n
        assert tn >= N or tn % 8 == 0, "block_n must be a multiple of 8"
    if tn >= N:
        tn = N                                # full batch: block == array dim
    num_tiles = (N + tn - 1) // tn
    needs_mask = (N % tn) != 0

    kernel = functools.partial(
        _multi_view_kernel, groups=groups, n_total=N, tile_n=tn,
        out_lanes=out_lanes, needs_mask=needs_mask)

    out = pl.pallas_call(
        kernel,
        out_shape=jax.ShapeDtypeStruct((num_tiles, 1, out_lanes), jnp.float32),
        grid=(num_tiles,),
        in_specs=[
            # one batch tile of ALL views, loaded once per grid step
            pl.BlockSpec((V, tn, D), lambda b: (0, b, 0)),
            # shared negative tile
            pl.BlockSpec((tn, D), lambda b: (b, 0)),
        ],
        out_specs=pl.BlockSpec((1, 1, out_lanes), lambda b: (b, 0, 0)),
        compiler_params=pltpu.CompilerParams(
            dimension_semantics=("parallel",),        # no cross-tile dependence
            vmem_limit_bytes=32 * 1024 * 1024),
    )(embeddings, negative)

    # Finalize: sum partial hinge sums over tiles -> per-pair batch mean -> mean.
    pair_sums = jnp.sum(out.reshape(num_tiles, out_lanes), axis=0)[:num_pairs]
    return jnp.mean(pair_sums / jnp.float32(N))


def _reference_loss(embeddings, negative):
    """Pure-JAX reference mirroring the PyTorch forward."""
    V = embeddings.shape[0]

    def trip(a, p, n):
        d_ap = jnp.sqrt(jnp.sum((a - p + _EPS) ** 2, axis=-1))
        d_an = jnp.sqrt(jnp.sum((a - n + _EPS) ** 2, axis=-1))
        return jnp.mean(jnp.maximum(d_ap - d_an + _MARGIN, 0.0))

    losses = [trip(embeddings[i], embeddings[j], negative)
              for i in range(V) for j in range(i + 1, V)]
    if losses:
        return jnp.mean(jnp.stack(losses))
    return trip(embeddings[0], embeddings[0], negative)


if __name__ == "__main__":
    key = jax.random.PRNGKey(0)
    k1, k2, k3, k4 = jax.random.split(key, 4)

    # Case 1: 4 views, batch 64, lane-dense D=128, batch tiled into 16-row blocks.
    V, N, D = 4, 64, 128
    emb = jax.random.normal(k1, (V, N, D), dtype=jnp.float32)
    neg = jax.random.normal(k2, (N, D), dtype=jnp.float32)
    loss = jax.block_until_ready(multi_view_similarity_loss(emb, neg, block_n=16))
    ref = _reference_loss(emb, neg)
    assert jnp.allclose(loss, ref, atol=1e-5, rtol=1e-5), (loss, ref)

    # Case 2: ragged batch (N=40, tile 16 -> last tile masked).
    V2, N2, D2 = 3, 40, 128
    emb2 = jax.random.normal(k3, (V2, N2, D2), dtype=jnp.float32)
    neg2 = jax.random.normal(k4, (N2, D2), dtype=jnp.float32)
    loss2 = jax.block_until_ready(multi_view_similarity_loss(emb2, neg2, block_n=16))
    ref2 = _reference_loss(emb2, neg2)
    assert jnp.allclose(loss2, ref2, atol=1e-5, rtol=1e-5), (loss2, ref2)

    # Case 3: degenerate single view -> triplet(e0, e0, negative) fallback.
    emb3 = emb2[:1]
    loss3 = jax.block_until_ready(multi_view_similarity_loss(emb3, neg2))
    ref3 = _reference_loss(emb3, neg2)
    assert jnp.allclose(loss3, ref3, atol=1e-5, rtol=1e-5), (loss3, ref3)

    print("KERNEL_OK")
</pallas_src>

<mosaic_0001>
module attributes {stable_mosaic.version = 11 : i64} {
  func.func @_multi_view_kernel(%arg0: i32, %arg1: memref<4x16x128xf32, #tpu.memory_space<vmem>>, %arg2: memref<16x128xf32, #tpu.memory_space<vmem>>, %arg3: memref<1x1x128xf32, #tpu.memory_space<vmem>>) attributes {dimension_semantics = [#tpu.dimension_semantics<parallel>], iteration_bounds = array<i64: 4>, scalar_prefetch = 0 : i64, scratch_operands = 0 : i64, tpu.core_type = #tpu.core_type<tc>, window_params = [{transform_indices = @transform_0, window_bounds = array<i64: 4, 16, 128>}, {transform_indices = @transform_1, window_bounds = array<i64: 16, 128>}, {transform_indices = @transform_2, window_bounds = array<i64: 1, 1, 128>}]} {
    %c0 = arith.constant 0 : index
    %c0_0 = arith.constant 0 : index
    %0 = vector.load %arg2[%c0, %c0_0] : memref<16x128xf32, #tpu.memory_space<vmem>>, vector<16x128xf32>
    %1 = tpu.iota {dimensions = array<i32: 1>} : vector<1x128xi32>
    %cst = arith.constant 0.000000e+00 : f32
    %2 = vector.broadcast %cst : f32 to vector<1x128xf32>
    %c0_1 = arith.constant 0 : index
    %c0_2 = arith.constant 0 : index
    %c0_3 = arith.constant 0 : index
    %3 = vector.load %arg1[%c0_1, %c0_2, %c0_3] : memref<4x16x128xf32, #tpu.memory_space<vmem>>, vector<1x16x128xf32>
    %4 = vector.shape_cast %3 : vector<1x16x128xf32> to vector<16x128xf32>
    %5 = arith.subf %4, %0 : vector<16x128xf32>
    %cst_4 = arith.constant 9.99999997E-7 : f32
    %6 = vector.broadcast %cst_4 : f32 to vector<16x128xf32>
    %7 = arith.addf %5, %6 : vector<16x128xf32>
    %8 = arith.mulf %7, %7 : vector<16x128xf32>
    %cst_5 = arith.constant dense<0.000000e+00> : vector<16xf32>
    %9 = vector.multi_reduction <add>, %8, %cst_5 [1] : vector<16x128xf32> to vector<16xf32>
    %10 = vector.shape_cast %9 : vector<16xf32> to vector<16x1xf32>
    %11 = math.sqrt %10 : vector<16x1xf32>
    %c1 = arith.constant 1 : index
    %c0_6 = arith.constant 0 : index
    %c0_7 = arith.constant 0 : index
    %12 = vector.load %arg1[%c1, %c0_6, %c0_7] : memref<4x16x128xf32, #tpu.memory_space<vmem>>, vector<1x16x128xf32>
    %13 = vector.shape_cast %12 : vector<1x16x128xf32> to vector<16x128xf32>
    %14 = arith.subf %4, %13 : vector<16x128xf32>
    %cst_8 = arith.constant 9.99999997E-7 : f32
    %15 = vector.broadcast %cst_8 : f32 to vector<16x128xf32>
    %16 = arith.addf %14, %15 : vector<16x128xf32>
    %17 = arith.mulf %16, %16 : vector<16x128xf32>
    %cst_9 = arith.constant dense<0.000000e+00> : vector<16xf32>
    %18 = vector.multi_reduction <add>, %17, %cst_9 [1] : vector<16x128xf32> to vector<16xf32>
    %19 = vector.shape_cast %18 : vector<16xf32> to vector<16x1xf32>
    %20 = math.sqrt %19 : vector<16x1xf32>
    %21 = arith.subf %20, %11 : vector<16x1xf32>
    %cst_10 = arith.constant 1.000000e+00 : f32
    %22 = vector.broadcast %cst_10 : f32 to vector<16x1xf32>
    %23 = arith.addf %21, %22 : vector<16x1xf32>
    %cst_11 = arith.constant 0.000000e+00 : f32
    %24 = vector.broadcast %cst_11 : f32 to vector<16x1xf32>
    %25 = arith.maximumf %23, %24 : vector<16x1xf32>
    %c0_i32 = arith.constant 0 : i32
    %26 = vector.broadcast %c0_i32 : i32 to vector<1x128xi32>
    %27 = arith.cmpi eq, %1, %26 : vector<1x128xi32>
    %28 = vector.shape_cast %25 : vector<16x1xf32> to vector<1x16x1xf32>
    %cst_12 = arith.constant dense<0.000000e+00> : vector<1xf32>
    %29 = vector.multi_reduction <add>, %28, %cst_12 [1, 2] : vector<1x16x1xf32> to vector<1xf32>
    %30 = vector.shape_cast %29 : vector<1xf32> to vector<1x1x1xf32>
    %31 = vector.extract %30[0, 0, 0] : f32 from vector<1x1x1xf32>
    %cst_13 = arith.constant 0.000000e+00 : f32
    %32 = vector.broadcast %31 : f32 to vector<1x128xf32>
    %33 = vector.broadcast %cst_13 : f32 to vector<1x128xf32>
    %34 = arith.select %27, %32, %33 : vector<1x128xi1>, vector<1x128xf32>
    %35 = arith.addf %2, %34 : vector<1x128xf32>
    %c2 = arith.constant 2 : index
    %c0_14 = arith.constant 0 : index
    %c0_15 = arith.constant 0 : index
    %36 = vector.load %arg1[%c2, %c0_14, %c0_15] : memref<4x16x128xf32, #tpu.memory_space<vmem>>, vector<1x16x128xf32>
    %37 = vector.shape_cast %36 : vector<1x16x128xf32> to vector<16x128xf32>
    %38 = arith.subf %4, %37 : vector<16x128xf32>
    %cst_16 = arith.constant 9.99999997E-7 : f32
    %39 = vector.broadcast %cst_16 : f32 to vector<16x128xf32>
    %40 = arith.addf %38, %39 : vector<16x128xf32>
    %41 = arith.mulf %40, %40 : vector<16x128xf32>
    %cst_17 = arith.constant dense<0.000000e+00> : vector<16xf32>
    %42 = vector.multi_reduction <add>, %41, %cst_17 [1] : vector<16x128xf32> to vector<16xf32>
    %43 = vector.shape_cast %42 : vector<16xf32> to vector<16x1xf32>
    %44 = math.sqrt %43 : vector<16x1xf32>
    %45 = arith.subf %44, %11 : vector<16x1xf32>
    %cst_18 = arith.constant 1.000000e+00 : f32
    %46 = vector.broadcast %cst_18 : f32 to vector<16x1xf32>
    %47 = arith.addf %45, %46 : vector<16x1xf32>
    %cst_19 = arith.constant 0.000000e+00 : f32
    %48 = vector.broadcast %cst_19 : f32 to vector<16x1xf32>
    %49 = arith.maximumf %47, %48 : vector<16x1xf32>
    %c1_i32 = arith.constant 1 : i32
    %50 = vector.broadcast %c1_i32 : i32 to vector<1x128xi32>
    %51 = arith.cmpi eq, %1, %50 : vector<1x128xi32>
    %52 = vector.shape_cast %49 : vector<16x1xf32> to vector<1x16x1xf32>
    %cst_20 = arith.constant dense<0.000000e+00> : vector<1xf32>
    %53 = vector.multi_reduction <add>, %52, %cst_20 [1, 2] : vector<1x16x1xf32> to vector<1xf32>
    %54 = vector.shape_cast %53 : vector<1xf32> to vector<1x1x1xf32>
    %55 = vector.extract %54[0, 0, 0] : f32 from vector<1x1x1xf32>
    %cst_21 = arith.constant 0.000000e+00 : f32
    %56 = vector.broadcast %55 : f32 to vector<1x128xf32>
    %57 = vector.broadcast %cst_21 : f32 to vector<1x128xf32>
    %58 = arith.select %51, %56, %57 : vector<1x128xi1>, vector<1x128xf32>
    %59 = arith.addf %35, %58 : vector<1x128xf32>
    %c3 = arith.constant 3 : index
    %c0_22 = arith.constant 0 : index
    %c0_23 = arith.constant 0 : index
    %60 = vector.load %arg1[%c3, %c0_22, %c0_23] : memref<4x16x128xf32, #tpu.memory_space<vmem>>, vector<1x16x128xf32>
    %61 = vector.shape_cast %60 : vector<1x16x128xf32> to vector<16x128xf32>
    %62 = arith.subf %4, %61 : vector<16x128xf32>
    %cst_24 = arith.constant 9.99999997E-7 : f32
    %63 = vector.broadcast %cst_24 : f32 to vector<16x128xf32>
    %64 = arith.addf %62, %63 : vector<16x128xf32>
    %65 = arith.mulf %64, %64 : vector<16x128xf32>
    %cst_25 = arith.constant dense<0.000000e+00> : vector<16xf32>
    %66 = vector.multi_reduction <add>, %65, %cst_25 [1] : vector<16x128xf32> to vector<16xf32>
    %67 = vector.shape_cast %66 : vector<16xf32> to vector<16x1xf32>
    %68 = math.sqrt %67 : vector<16x1xf32>
    %69 = arith.subf %68, %11 : vector<16x1xf32>
    %cst_26 = arith.constant 1.000000e+00 : f32
    %70 = vector.broadcast %cst_26 : f32 to vector<16x1xf32>
    %71 = arith.addf %69, %70 : vector<16x1xf32>
    %cst_27 = arith.constant 0.000000e+00 : f32
    %72 = vector.broadcast %cst_27 : f32 to vector<16x1xf32>
    %73 = arith.maximumf %71, %72 : vector<16x1xf32>
    %c2_i32 = arith.constant 2 : i32
    %74 = vector.broadcast %c2_i32 : i32 to vector<1x128xi32>
    %75 = arith.cmpi eq, %1, %74 : vector<1x128xi32>
    %76 = vector.shape_cast %73 : vector<16x1xf32> to vector<1x16x1xf32>
    %cst_28 = arith.constant dense<0.000000e+00> : vector<1xf32>
    %77 = vector.multi_reduction <add>, %76, %cst_28 [1, 2] : vector<1x16x1xf32> to vector<1xf32>
    %78 = vector.shape_cast %77 : vector<1xf32> to vector<1x1x1xf32>
    %79 = vector.extract %78[0, 0, 0] : f32 from vector<1x1x1xf32>
    %cst_29 = arith.constant 0.000000e+00 : f32
    %80 = vector.broadcast %79 : f32 to vector<1x128xf32>
    %81 = vector.broadcast %cst_29 : f32 to vector<1x128xf32>
    %82 = arith.select %75, %80, %81 : vector<1x128xi1>, vector<1x128xf32>
    %83 = arith.addf %59, %82 : vector<1x128xf32>
    %c1_30 = arith.constant 1 : index
    %c0_31 = arith.constant 0 : index
    %c0_32 = arith.constant 0 : index
    %84 = vector.load %arg1[%c1_30, %c0_31, %c0_32] : memref<4x16x128xf32, #tpu.memory_space<vmem>>, vector<1x16x128xf32>
    %85 = vector.shape_cast %84 : vector<1x16x128xf32> to vector<16x128xf32>
    %86 = arith.subf %85, %0 : vector<16x128xf32>
    %cst_33 = arith.constant 9.99999997E-7 : f32
    %87 = vector.broadcast %cst_33 : f32 to vector<16x128xf32>
    %88 = arith.addf %86, %87 : vector<16x128xf32>
    %89 = arith.mulf %88, %88 : vector<16x128xf32>
    %cst_34 = arith.constant dense<0.000000e+00> : vector<16xf32>
    %90 = vector.multi_reduction <add>, %89, %cst_34 [1] : vector<16x128xf32> to vector<16xf32>
    %91 = vector.shape_cast %90 : vector<16xf32> to vector<16x1xf32>
    %92 = math.sqrt %91 : vector<16x1xf32>
    %c2_35 = arith.constant 2 : index
    %c0_36 = arith.constant 0 : index
    %c0_37 = arith.constant 0 : index
    %93 = vector.load %arg1[%c2_35, %c0_36, %c0_37] : memref<4x16x128xf32, #tpu.memory_space<vmem>>, vector<1x16x128xf32>
    %94 = vector.shape_cast %93 : vector<1x16x128xf32> to vector<16x128xf32>
    %95 = arith.subf %85, %94 : vector<16x128xf32>
    %cst_38 = arith.constant 9.99999997E-7 : f32
    %96 = vector.broadcast %cst_38 : f32 to vector<16x128xf32>
    %97 = arith.addf %95, %96 : vector<16x128xf32>
    %98 = arith.mulf %97, %97 : vector<16x128xf32>
    %cst_39 = arith.constant dense<0.000000e+00> : vector<16xf32>
    %99 = vector.multi_reduction <add>, %98, %cst_39 [1] : vector<16x128xf32> to vector<16xf32>
    %100 = vector.shape_cast %99 : vector<16xf32> to vector<16x1xf32>
    %101 = math.sqrt %100 : vector<16x1xf32>
    %102 = arith.subf %101, %92 : vector<16x1xf32>
    %cst_40 = arith.constant 1.000000e+00 : f32
    %103 = vector.broadcast %cst_40 : f32 to vector<16x1xf32>
    %104 = arith.addf %102, %103 : vector<16x1xf32>
    %cst_41 = arith.constant 0.000000e+00 : f32
    %105 = vector.broadcast %cst_41 : f32 to vector<16x1xf32>
    %106 = arith.maximumf %104, %105 : vector<16x1xf32>
    %c3_i32 = arith.constant 3 : i32
    %107 = vector.broadcast %c3_i32 : i32 to vector<1x128xi32>
    %108 = arith.cmpi eq, %1, %107 : vector<1x128xi32>
    %109 = vector.shape_cast %106 : vector<16x1xf32> to vector<1x16x1xf32>
    %cst_42 = arith.constant dense<0.000000e+00> : vector<1xf32>
    %110 = vector.multi_reduction <add>, %109, %cst_42 [1, 2] : vector<1x16x1xf32> to vector<1xf32>
    %111 = vector.shape_cast %110 : vector<1xf32> to vector<1x1x1xf32>
    %112 = vector.extract %111[0, 0, 0] : f32 from vector<1x1x1xf32>
    %cst_43 = arith.constant 0.000000e+00 : f32
    %113 = vector.broadcast %112 : f32 to vector<1x128xf32>
    %114 = vector.broadcast %cst_43 : f32 to vector<1x128xf32>
    %115 = arith.select %108, %113, %114 : vector<1x128xi1>, vector<1x128xf32>
    %116 = arith.addf %83, %115 : vector<1x128xf32>
    %c3_44 = arith.constant 3 : index
    %c0_45 = arith.constant 0 : index
    %c0_46 = arith.constant 0 : index
    %117 = vector.load %arg1[%c3_44, %c0_45, %c0_46] : memref<4x16x128xf32, #tpu.memory_space<vmem>>, vector<1x16x128xf32>
    %118 = vector.shape_cast %117 : vector<1x16x128xf32> to vector<16x128xf32>
    %119 = arith.subf %85, %118 : vector<16x128xf32>
    %cst_47 = arith.constant 9.99999997E-7 : f32
    %120 = vector.broadcast %cst_47 : f32 to vector<16x128xf32>
    %121 = arith.addf %119, %120 : vector<16x128xf32>
    %122 = arith.mulf %121, %121 : vector<16x128xf32>
    %cst_48 = arith.constant dense<0.000000e+00> : vector<16xf32>
    %123 = vector.multi_reduction <add>, %122, %cst_48 [1] : vector<16x128xf32> to vector<16xf32>
    %124 = vector.shape_cast %123 : vector<16xf32> to vector<16x1xf32>
    %125 = math.sqrt %124 : vector<16x1xf32>
    %126 = arith.subf %125, %92 : vector<16x1xf32>
    %cst_49 = arith.constant 1.000000e+00 : f32
    %127 = vector.broadcast %cst_49 : f32 to vector<16x1xf32>
    %128 = arith.addf %126, %127 : vector<16x1xf32>
    %cst_50 = arith.constant 0.000000e+00 : f32
    %129 = vector.broadcast %cst_50 : f32 to vector<16x1xf32>
    %130 = arith.maximumf %128, %129 : vector<16x1xf32>
    %c4_i32 = arith.constant 4 : i32
    %131 = vector.broadcast %c4_i32 : i32 to vector<1x128xi32>
    %132 = arith.cmpi eq, %1, %131 : vector<1x128xi32>
    %133 = vector.shape_cast %130 : vector<16x1xf32> to vector<1x16x1xf32>
    %cst_51 = arith.constant dense<0.000000e+00> : vector<1xf32>
    %134 = vector.multi_reduction <add>, %133, %cst_51 [1, 2] : vector<1x16x1xf32> to vector<1xf32>
    %135 = vector.shape_cast %134 : vector<1xf32> to vector<1x1x1xf32>
    %136 = vector.extract %135[0, 0, 0] : f32 from vector<1x1x1xf32>
    %cst_52 = arith.constant 0.000000e+00 : f32
    %137 = vector.broadcast %136 : f32 to vector<1x128xf32>
    %138 = vector.broadcast %cst_52 : f32 to vector<1x128xf32>
    %139 = arith.select %132, %137, %138 : vector<1x128xi1>, vector<1x128xf32>
    %140 = arith.addf %116, %139 : vector<1x128xf32>
    %c2_53 = arith.constant 2 : index
    %c0_54 = arith.constant 0 : index
    %c0_55 = arith.constant 0 : index
    %141 = vector.load %arg1[%c2_53, %c0_54, %c0_55] : memref<4x16x128xf32, #tpu.memory_space<vmem>>, vector<1x16x128xf32>
    %142 = vector.shape_cast %141 : vector<1x16x128xf32> to vector<16x128xf32>
    %143 = arith.subf %142, %0 : vector<16x128xf32>
    %cst_56 = arith.constant 9.99999997E-7 : f32
    %144 = vector.broadcast %cst_56 : f32 to vector<16x128xf32>
    %145 = arith.addf %143, %144 : vector<16x128xf32>
    %146 = arith.mulf %145, %145 : vector<16x128xf32>
    %cst_57 = arith.constant dense<0.000000e+00> : vector<16xf32>
    %147 = vector.multi_reduction <add>, %146, %cst_57 [1] : vector<16x128xf32> to vector<16xf32>
    %148 = vector.shape_cast %147 : vector<16xf32> to vector<16x1xf32>
    %149 = math.sqrt %148 : vector<16x1xf32>
    %c3_58 = arith.constant 3 : index
    %c0_59 = arith.constant 0 : index
    %c0_60 = arith.constant 0 : index
    %150 = vector.load %arg1[%c3_58, %c0_59, %c0_60] : memref<4x16x128xf32, #tpu.memory_space<vmem>>, vector<1x16x128xf32>
    %151 = vector.shape_cast %150 : vector<1x16x128xf32> to vector<16x128xf32>
    %152 = arith.subf %142, %151 : vector<16x128xf32>
    %cst_61 = arith.constant 9.99999997E-7 : f32
    %153 = vector.broadcast %cst_61 : f32 to vector<16x128xf32>
    %154 = arith.addf %152, %153 : vector<16x128xf32>
    %155 = arith.mulf %154, %154 : vector<16x128xf32>
    %cst_62 = arith.constant dense<0.000000e+00> : vector<16xf32>
    %156 = vector.multi_reduction <add>, %155, %cst_62 [1] : vector<16x128xf32> to vector<16xf32>
    %157 = vector.shape_cast %156 : vector<16xf32> to vector<16x1xf32>
    %158 = math.sqrt %157 : vector<16x1xf32>
    %159 = arith.subf %158, %149 : vector<16x1xf32>
    %cst_63 = arith.constant 1.000000e+00 : f32
    %160 = vector.broadcast %cst_63 : f32 to vector<16x1xf32>
    %161 = arith.addf %159, %160 : vector<16x1xf32>
    %cst_64 = arith.constant 0.000000e+00 : f32
    %162 = vector.broadcast %cst_64 : f32 to vector<16x1xf32>
    %163 = arith.maximumf %161, %162 : vector<16x1xf32>
    %c5_i32 = arith.constant 5 : i32
    %164 = vector.broadcast %c5_i32 : i32 to vector<1x128xi32>
    %165 = arith.cmpi eq, %1, %164 : vector<1x128xi32>
    %166 = vector.shape_cast %163 : vector<16x1xf32> to vector<1x16x1xf32>
    %cst_65 = arith.constant dense<0.000000e+00> : vector<1xf32>
    %167 = vector.multi_reduction <add>, %166, %cst_65 [1, 2] : vector<1x16x1xf32> to vector<1xf32>
    %168 = vector.shape_cast %167 : vector<1xf32> to vector<1x1x1xf32>
    %169 = vector.extract %168[0, 0, 0] : f32 from vector<1x1x1xf32>
    %cst_66 = arith.constant 0.000000e+00 : f32
    %170 = vector.broadcast %169 : f32 to vector<1x128xf32>
    %171 = vector.broadcast %cst_66 : f32 to vector<1x128xf32>
    %172 = arith.select %165, %170, %171 : vector<1x128xi1>, vector<1x128xf32>
    %173 = arith.addf %140, %172 : vector<1x128xf32>
    %174 = vector.shape_cast %173 : vector<1x128xf32> to vector<1x1x128xf32>
    %c0_67 = arith.constant 0 : index
    %c0_68 = arith.constant 0 : index
    %c0_69 = arith.constant 0 : index
    %175 = vector.load %arg3[%c0_67, %c0_68, %c0_69] : memref<1x1x128xf32, #tpu.memory_space<vmem>>, vector<1x1x128xf32>
    tpu.vector_store %arg3[%c0_67, %c0_68, %c0_69], %174 {strides = array<i32>} : memref<1x1x128xf32, #tpu.memory_space<vmem>>, vector<1x1x128xf32>,
    return
  }
  func.func @transform_0(%arg0: i32) -> (i32, i32, i32) {
    %c0_i32 = arith.constant 0 : i32
    %c0_i32_0 = arith.constant 0 : i32
    %c0_i32_1 = arith.constant 0 : i32
    return %c0_i32, %arg0, %c0_i32_0 : i32, i32, i32
  }
  func.func @transform_1(%arg0: i32) -> (i32, i32) {
    %c0_i32 = arith.constant 0 : i32
    %c0_i32_0 = arith.constant 0 : i32
    return %arg0, %c0_i32 : i32, i32
  }
  func.func @transform_2(%arg0: i32) -> (i32, i32, i32) {
    %c0_i32 = arith.constant 0 : i32
    %c0_i32_0 = arith.constant 0 : i32
    %c0_i32_1 = arith.constant 0 : i32
    return %arg0, %c0_i32, %c0_i32_0 : i32, i32, i32
  }
}

</mosaic_0001>

<bundles_post_ra>
// kernel: multi_view_similarity_loss.1
= control target key start
LH: loop header
LB: loop body
LE: loop exit
PB: predicated region body
PF: predicated region fallthrough
CT: control target
= control target key end

     0   :  { %7 = vsyncpa [#allocation3], 0  ;;  %s1224_s0 = inlined_call_operand.hbm [shape: f32[4,64,128], index: 0, kind: input, shape index: {}]   ;;  %s1225_s1 = inlined_call_operand.hbm [shape: f32[64,128], index: 1, kind: input, shape index: {}]   ;;  %s1226_s2 = inlined_call_operand.vmem [shape: f32[4,1,128], index: 2, kind: output, shape index: {}]  }
   0x1   :  { %9 = vsyncpa [#allocation3 + $0x1], 0 }
   0x2   :  { %10 = vsyncpa [#allocation5], 0 }
   0x3   :  { %12 = vsyncpa [#allocation5 + $0x1], 0  ;;  %s889_s9 = smov 0   ;;  %s891_s10 = smov 0  }
   0x4   :  { %s893_s11 = smov 0   ;;  %s895_s12 = smov 0  }
   0x5 LB: > { %s908_s13 = sadd.s32 4294967295, %s863_s12   ;;  %s911_s14 = sadd.s32 1, %s863_s12   ;;  %s863_s12 = sphi %s895_s12, %s1232_s12   ;;  %s859_s11 = sphi %s893_s11, %s1231_s11   ;;  %s855_s10 = sphi %s891_s10, %s1230_s10   ;;  %s851_s9 = sphi %s889_s9, %s1229_s9  }
   0x6   : > { %s22_s15 = ssub.s32 %s863_s12, %s911_s14  ;;  %s25_s16 = sadd.s32 1, %s859_s11 }
   0x7   : > { %p23_p0 = scmp.eq.s32.totalorder %s22_s15, 0  ;;  %p32_p1 = scmp.ne.s32.totalorder %s859_s11, %s855_s10 }
   0x8   : > { %p33_p2 = scmp.eq.s32.totalorder %s863_s12, 0  ;;  %p38_p3 = scmp.ne.s32.totalorder %s855_s10, %s851_s9 }
   0x9   : > { %s921_s17 = scalar_select %p23_p0, %s859_s11, %s25_s16  }
   0xa   : > { %p923_p4 = por %p33_p2, %p32_p1  ;;  %p39_p5 = scmp.eq.s32.totalorder %s908_s13, 0 }
   0xb   : > { %p676_p7 = scmp.ge.s32.totalorder %s863_s12, 4 }
   0xc   : > { %p928_p6 = por %p39_p5, %p38_p3 }
   0xd   : > { %110 = sbr.rel (%p676_p7) target bundleno = 58 (0x3a), region = 16 }
  0x14   : > { %s934_s20 = sand.u32 1, %s859_s11   ;;  %s696_s21 = sshll.u32 %s863_s12, 8 }
  0x15   : > { %s677_s22 = sshll.u32 %s934_s20, 6  ;;  %s124_s25 = scalar_lea.hbm %s1224_s0, %s696_s21 }
  0x16   : > { %s710_s26 = scalar_select %p923_p4, [#allocation0], [#allocation8] }
  0x17   : > { %s118_s27 = scalar_lea.vmem [#allocation2], %s677_s22  ;;  %s865_s30 = smov 1024  }
  0x18   : > { %s137_s28 = sshll.u32 %s118_s27, 4  ;;  %s129_s29 = sld [smem:[%s710_s26]]   ;;  %s138_s28 = int_to_ptr.vmem [resolvable:$true] %s137_s28 }
  0x19   : > { %711 = sst [smem:[#allocation7]] (%p923_p4), %s865_s30  ;;  %s866_s3 = smov 256  }
  0x1a   : > { %712 = sst [smem:[#allocation7 + $0x1]] (%p923_p4), %s866_s3  ;;  %s867_s4 = smov 2  }
  0x1b   : > { %713 = sst [smem:[#allocation7 + $0x2]] (%p923_p4), %s867_s4  ;;  %s868_s5 = smov 128  }
  0x1c   : > { %714 = sst [smem:[#allocation7 + $0x3]] (%p923_p4), %s868_s5  ;;  %s869_s7 = smov 8  }
  0x1d   : > { %715 = sst [smem:[#allocation7 + $0x4]] (%p923_p4), %s868_s5  ;;  %s115_s9 = scalar_lea.sflag [#allocation3], %s934_s20 }
  0x1e   : > { %s680_s6 = sshll.u32 %s129_s29, 26  ;;  %716 = sst [smem:[#allocation7 + $0x5]] (%p923_p4), %s869_s7 }
  0x1f   : > { %s681_s8 = sadd.s32 134217728, %s680_s6  ;;  %s870_s15 = smov [#allocation6]  }
  0x20   : > { %717 = dma.general (%p923_p4), %s124_s25, 1024, %s138_s28, %s115_s9, %s870_s15, [#allocation7], %s681_s8, 0  }
  0x21   : > { %s682_s16 = sshll.u32 %s934_s20, 4  ;;  %s962_s24 = scalar_lea.hbm %s1225_s1, %s696_s21 }
  0x22   : > { %s164_s26 = scalar_lea.vmem [#allocation4], %s682_s16  ;;  %s161_s29 = scalar_lea.sflag [#allocation5], %s934_s20 }
  0x23   : > { %s171_s27 = sshll.u32 %s164_s26, 4  ;;  %s797_s30 = scalar_lea.hbm %s962_s24, 256  ;;  %s964_s27 = int_to_ptr.vmem [resolvable:$true] %s171_s27 }
  0x24   : > { %p798_p8 = scmp.ne.s32.totalorder %s962_s24, %s797_s30  ;;  %s801_s3 = scalar_lea.hbm %s1225_s1, 1024 }
  0x25   : > { %p802_p11 = scmp.lt.u32.totalorder %s962_s24, %s1225_s1  ;;  %p803_p12 = scmp.lt.u32.totalorder %s801_s3, %s797_s30 }
  0x26   : > { %p799_p9 = pnand %p798_p8, %p923_p4  ;;  %p805_p0 = scmp.lt.u32.totalorder %s797_s30, %s962_s24 }
  0x27   : > { %p804_p13 = por %p803_p12, %p802_p11 }
  0x28   : > { %p800_p10 = pneg %p799_p9 }
  0x29   : > { %p806_p1 = por %p805_p0, %p804_p13 }
  0x2b   : > { %p807_p2 = pnand %p806_p1, %p800_p10 }
  0x2d   : > { %810 = shalt.err (!%p807_p2)
}
  0x2e   : > { %s811_s5 = scalar_lea.vmem %s964_s27, 256  ;;  %s871_s6 = smov [#allocation4]  }
  0x2f   : > { %p812_p3 = scmp.ne.s32.totalorder %s964_s27, %s811_s5  ;;  %s815_s7 = sshll.u32 %s871_s6, 4  ;;  %s816_s7 = int_to_ptr.vmem [resolvable:$false] %s815_s7 }
  0x30   : > { %s817_s8 = scalar_lea.vmem %s816_s7, 512  ;;  %p818_p8 = scmp.lt.s32.totalorder %s964_s27, %s816_s7 }
  0x31   : > { %p813_p5 = pnand %p812_p3, %p923_p4  ;;  %p819_p9 = scmp.lt.s32.totalorder %s817_s8, %s811_s5 }
  0x33   : > { %p814_p7 = pneg %p813_p5  ;;  %p820_p11 = por %p819_p9, %p818_p8 }
  0x35   : > { %p821_p12 = pnand %p820_p11, %p814_p7 }
  0x37   : > { %824 = shalt.err (!%p821_p12)
}
  0x38   : > { %s872_s9 = smov 128   ;;  %s873_s15 = smov 8  }
  0x39   : > { %718 = dma.hbm_to_vmem [thread:$0]  (%p923_p4), %s962_s24, 256, %s964_s27, %s161_s29, %s872_s9, %s872_s9, %s873_s15  }
  0x3a PF: > { %p685_p10 = scmp.ge.s32.totalorder %s863_s12, 1  ;;  %p179_p13 = scmp.lt.s32.totalorder %s863_s12, 5 }
  0x3c   : > { %p180_p0 = pnand %p685_p10, %p179_p13 }
  0x3d   : > { %s185_s16 = sand.u32 (!%p180_p0), 1, %s855_s10  }
  0x3e   : > { %183 = sbr.rel (%p180_p0) target bundleno = 490 (0x1ea), region = 28  ;;  %s686_s22 = sshll.u32 (!%p180_p0), %s185_s16, 6 }
  0x3f   : > { %s186_s23 = scalar_lea.sflag (!%p180_p0), [#allocation3], %s185_s16  ;;  %s189_s26 = scalar_lea.vmem (!%p180_p0), [#allocation2], %s686_s22 }
  0x45   : > { %842 = dma.done.wait (%p928_p6), %s186_s23, 1024  }
  0x46   : > { %844 = vsyncadd (%p928_p6), %s186_s23, 4294966272  ;;  %s687_s18 = sshll.u32 %s185_s16, 4  ;;  %s195_s20 = scalar_lea.sflag [#allocation5], %s185_s16 }
  0x47   : > { %s198_s24 = scalar_lea.vmem [#allocation4], %s687_s18 }
  0x48   : > { %846 = dma.done.wait (%p928_p6), %s195_s20, 256  }
  0x49   : > { %848 = vsyncadd (%p928_p6), %s195_s20, 4294967040  ;;  %v231_v0 = vld [vmem:[%s189_s26] sm:$0xff]  ;;  %v688_v1 = vld [vmem:[%s189_s26 + $0x10] sm:$0xff]  ;;  %vm291_vm6 = vcmask 7168   ;;  %p224_p4 = scmp.lt.s32.totalorder %s908_s13, 3 }
  0x4a   : > { %v1001_v2 = vld [vmem:[%s198_s24] sm:$0xff]  ;;  %v260_v3 = vsub.f32 %v231_v0, %v688_v1  ;;  %v232_v5 = vld [vmem:[%s189_s26 + $0x8] sm:$0xff]  ;;  %v689_v6 = vld [vmem:[%s189_s26 + $0x18] sm:$0xff] }
  0x4b   : > { %v233_v4 = vsub.f32 %v231_v0, %v1001_v2  ;;  %v228_v7 = vld [vmem:[%s198_s24 + $0x8] sm:$0xff]  ;;  %v261_v8 = vsub.f32 %v232_v5, %v689_v6  ;;  %v1006_v11 = vld [vmem:[%s189_s26 + $0x20] sm:$0xff]  ;;  %v692_v17 = vld [vmem:[%s189_s26 + $0x30] sm:$0xff]  ;;  %v405_v30 = vsub.f32 %v688_v1, %v1001_v2  ;;  %s1234_s13 = smov (!%p224_p4, %s908_s13), 3 }
  0x4c   : > { %v234_v9 = vsub.f32 %v232_v5, %v228_v7  ;;  %v1004_v10 = vld [vmem:[%s189_s26 + $0x28] sm:$0xff]  ;;  %v262_v12 = vadd.f32 1e-06, %v260_v3  ;;  %v310_v15 = vsub.f32 %v231_v0, %v1006_v11  ;;  %v693_v16 = vld [vmem:[%s189_s26 + $0x38] sm:$0xff]  ;;  %v359_v23 = vsub.f32 %v231_v0, %v692_v17  ;;  %s226_s21 = scalar_lea.vmem %s1226_s2, %s1234_s13 }
  0x4d   : > { %v235_v13 = vadd.f32 1e-06, %v233_v4  ;;  %v311_v14 = vsub.f32 %v232_v5, %v1004_v10  ;;  %v263_v18 = vadd.f32 1e-06, %v261_v8  ;;  %v360_v22 = vsub.f32 %v232_v5, %v693_v16 }
  0x4e   : > { %v236_v19 = vadd.f32 1e-06, %v234_v9  ;;  %v264_v20 = vmul.f32 %v262_v12, %v262_v12  ;;  %v312_v27 = vadd.f32 1e-06, %v310_v15  ;;  %v406_v29 = vsub.f32 %v689_v6, %v228_v7 }
  0x4f   : > { %v237_v21 = vmul.f32 %v235_v13, %v235_v13  ;;  %v265_v24 = vmul.f32 %v263_v18, %v263_v18  ;;  %v313_v26 = vadd.f32 1e-06, %v311_v14  ;;  %v362_v28 = vadd.f32 1e-06, %v360_v22 }
  0x50   : > { %266 = vadd.xlane.f32.xlu1 %v264_v20  ;;  %v238_v25 = vmul.f32 %v236_v19, %v236_v19  ;;  %v314_v32 = vmul.f32 %v312_v27, %v312_v27  ;;  %v361_v33 = vadd.f32 1e-06, %v359_v23  ;;  %v408_v35 = vadd.f32 1e-06, %v406_v29 }
  0x51   : > { %239 = vadd.xlane.f32.xlu0 %v237_v21  ;;  %v315_v31 = vmul.f32 %v313_v26, %v313_v26  ;;  %v364_v34 = vmul.f32 %v362_v28, %v362_v28  ;;  %v407_v36 = vadd.f32 1e-06, %v405_v30  ;;  %v430_v38 = vsub.f32 %v689_v6, %v1004_v10 }
  0x52   : > { %v363_v37 = vmul.f32 %v361_v33, %v361_v33  ;;  %v429_v39 = vsub.f32 %v688_v1, %v1006_v11  ;;  %v410_v40 = vmul.f32 %v408_v35, %v408_v35  ;;  %v476_v44 = vsub.f32 %v689_v6, %v693_v16 }
  0x53   : > { %v409_v41 = vmul.f32 %v407_v36, %v407_v36  ;;  %v432_v42 = vadd.f32 1e-06, %v430_v38  ;;  %v475_v45 = vsub.f32 %v688_v1, %v692_v17  ;;  %v522_v46 = vsub.f32 %v1004_v10, %v228_v7 }
  0x54   : > { %268 = vadd.xlane.f32.xlu1 %v265_v24  ;;  %v431_v43 = vadd.f32 1e-06, %v429_v39  ;;  %v521_v47 = vsub.f32 %v1006_v11, %v1001_v2  ;;  %v478_v50 = vadd.f32 1e-06, %v476_v44  ;;  %v546_v52 = vsub.f32 %v1004_v10, %v693_v16 }
  0x55   : > { %241 = vadd.xlane.f32.xlu0 %v238_v25  ;;  %v434_v48 = vmul.f32 %v432_v42, %v432_v42  ;;  %v477_v51 = vadd.f32 1e-06, %v475_v45  ;;  %v545_v53 = vsub.f32 %v1006_v11, %v692_v17  ;;  %v524_v56 = vadd.f32 1e-06, %v522_v46 }
  0x56   : > { %v433_v49 = vmul.f32 %v431_v43, %v431_v43  ;;  %v480_v54 = vmul.f32 %v478_v50, %v478_v50  ;;  %v523_v57 = vadd.f32 1e-06, %v521_v47  ;;  %v548_v60 = vadd.f32 1e-06, %v546_v52 }
  0x57   : > { %v479_v55 = vmul.f32 %v477_v51, %v477_v51  ;;  %v526_v58 = vmul.f32 %v524_v56, %v524_v56  ;;  %v547_v61 = vadd.f32 1e-06, %v545_v53 }
  0x58   : > { %318 = vadd.xlane.f32.xlu1 %v315_v31  ;;  %v525_v59 = vmul.f32 %v523_v57, %v523_v57  ;;  %v550_v62 = vmul.f32 %v548_v60, %v548_v60 }
  0x59   : > { %316 = vadd.xlane.f32.xlu0 %v314_v32  ;;  %v549_v63 = vmul.f32 %v547_v61, %v547_v61 }
  0x5c   : > { %367 = vadd.xlane.f32.xlu1 %v364_v34 }
  0x5d   : > { %365 = vadd.xlane.f32.xlu0 %v363_v37 }
  0x60   : > { %413 = vadd.xlane.f32.xlu1 %v410_v40 }
  0x61   : > { %411 = vadd.xlane.f32.xlu0 %v409_v41 }
  0x64   : > { %437 = vadd.xlane.f32.xlu1 %v434_v48 }
  0x65   : > { %435 = vadd.xlane.f32.xlu0 %v433_v49 }
  0x68   : > { %483 = vadd.xlane.f32.xlu1 %v480_v54 }
  0x69   : > { %481 = vadd.xlane.f32.xlu0 %v479_v55 }
  0x6c   : > { %529 = vadd.xlane.f32.xlu1 %v526_v58 }
  0x6d   : > { %527 = vadd.xlane.f32.xlu0 %v525_v59 }
  0x70   : > { %553 = vadd.xlane.f32.xlu1 %v550_v62 }
  0x71   : > { %551 = vadd.xlane.f32.xlu0 %v549_v63 }
  0xdd   : > { %v267_v0 = vpop.xlane.xlu1 %266 }
  0xde   : > { %v240_v1 = vpop.xlane.xlu0 %239  ;;  %761 = vrsqrt.f32 %v267_v0  ;;  %vm272_vm2 = vcmp.eq.f32.partialorder %v267_v0, inf  ;;  %vm274_vm3 = vcmp.eq.f32.partialorder %v267_v0, 0.0  ;;  %v275_v8 = vand.u32 2147483648, %v267_v0 }
  0xdf   : > { %763 = vrsqrt.f32 %v240_v1  ;;  %vm245_vm0 = vcmp.eq.f32.partialorder %v240_v1, inf  ;;  %v248_v6 = vand.u32 2147483648, %v240_v1  ;;  %vm247_vm1 = vcmp.eq.f32.partialorder %v240_v1, 0.0 }
  0xe1   : > { %v269_v2 = vpop.xlane.xlu1 %268 }
  0xe2   : > { %v1018_v3 = vpop.xlane.xlu0 %241  ;;  %765 = vrsqrt.f32 %v269_v2  ;;  %vm279_vm7 = vcmp.eq.f32.partialorder %v269_v2, inf  ;;  %vm281_vm8 = vcmp.eq.f32.partialorder %v269_v2, 0.0  ;;  %v282_v16 = vand.u32 2147483648, %v269_v2 }
  0xe3   : > { %767 = vrsqrt.f32 %v1018_v3  ;;  %vm252_vm4 = vcmp.eq.f32.partialorder %v1018_v3, inf  ;;  %v255_v11 = vand.u32 2147483648, %v1018_v3  ;;  %vm254_vm5 = vcmp.eq.f32.partialorder %v1018_v3, 0.0 }
  0xe5   : > { %v1021_v4 = vpop.xlane.xlu1 %318 }
  0xe6   : > { %v1023_v5 = vpop.xlane.xlu0 %316  ;;  %769 = vrsqrt.f32 %v1021_v4  ;;  %vm329_vm11 = vcmp.eq.f32.partialorder %v1021_v4, inf  ;;  %vm331_vm12 = vcmp.eq.f32.partialorder %v1021_v4, 0.0  ;;  %v332_v28 = vand.u32 2147483648, %v1021_v4 }
  0xe7   : > { %771 = vrsqrt.f32 %v1023_v5  ;;  %vm322_vm9 = vcmp.eq.f32.partialorder %v1023_v5, inf  ;;  %vm324_vm10 = vcmp.eq.f32.partialorder %v1023_v5, 0.0  ;;  %v325_v20 = vand.u32 2147483648, %v1023_v5 }
  0xe8   : > { %v762_v7 = vpop.eup %761 }
  0xe9   : > { %v764_v9 = vpop.eup %763  ;;  %v271_v10 = vmul.f32 %v762_v7, %v267_v0  ;;  %v1029_v12 = vpop.xlane.xlu1 %367 }
  0xea   : > { %v1031_v13 = vpop.xlane.xlu0 %365  ;;  %v244_v14 = vmul.f32 %v764_v9, %v240_v1  ;;  %773 = vrsqrt.f32 %v1029_v12  ;;  %vm378_vm14 = vcmp.eq.f32.partialorder %v1029_v12, inf  ;;  %v381_v40 = vand.u32 2147483648, %v1029_v12 }
  0xeb   : > { %775 = vrsqrt.f32 %v1031_v13  ;;  %v273_v15 = vsel %vm272_vm2, %v267_v0, %v271_v10  ;;  %vm371_vm13 = vcmp.eq.f32.partialorder %v1031_v13, inf  ;;  %v374_v30 = vand.u32 2147483648, %v1031_v13 }
  0xec   : > { %v766_v17 = vpop.eup %765  ;;  %v246_v18 = vsel %vm245_vm0, %v240_v1, %v244_v14  ;;  %v276_v19 = vsel %vm274_vm3, %v275_v8, %v273_v15  ;;  %vm373_vm15 = vcmp.eq.f32.partialorder %v1031_v13, 0.0  ;;  %vm380_vm0 = vcmp.eq.f32.partialorder %v1029_v12, 0.0 }
  0xed   : > { %v768_v21 = vpop.eup %767  ;;  %v278_v22 = vmul.f32 %v766_v17, %v269_v2  ;;  %v1042_v23 = vpop.xlane.xlu1 %413  ;;  %v1047_v25 = vsel %vm247_vm1, %v248_v6, %v246_v18 }
  0xee   : > { %v1044_v24 = vpop.xlane.xlu0 %411  ;;  %v251_v26 = vmul.f32 %v768_v21, %v1018_v3  ;;  %777 = vrsqrt.f32 %v1042_v23  ;;  %v284_v27 = vsub.f32 %v276_v19, %v1047_v25  ;;  %vm424_vm1 = vcmp.eq.f32.partialorder %v1042_v23, inf }
  0xef   : > { %779 = vrsqrt.f32 %v1044_v24  ;;  %v280_v29 = vsel %vm279_vm7, %v269_v2, %v278_v22  ;;  %v420_v41 = vand.u32 2147483648, %v1044_v24  ;;  %vm417_vm2 = vcmp.eq.f32.partialorder %v1044_v24, inf }
  0xf0   : > { %v770_v31 = vpop.eup %769  ;;  %v253_v32 = vsel %vm252_vm4, %v1018_v3, %v251_v26  ;;  %v283_v33 = vsel %vm281_vm8, %v282_v16, %v280_v29  ;;  %v286_v34 = vadd.f32 1.0, %v284_v27  ;;  %vm426_vm3 = vcmp.eq.f32.partialorder %v1042_v23, 0.0 }
  0xf1   : > { %v772_v35 = vpop.eup %771  ;;  %v328_v36 = vmul.f32 %v770_v31, %v1021_v4  ;;  %v1067_v37 = vpop.xlane.xlu1 %437  ;;  %v1073_v39 = vsel %vm254_vm5, %v255_v11, %v253_v32  ;;  %v427_v46 = vand.u32 2147483648, %v1042_v23  ;;  %vm419_vm4 = vcmp.eq.f32.partialorder %v1044_v24, 0.0 }
  0xf2   : > { %v1069_v38 = vpop.xlane.xlu0 %435  ;;  %v321_v42 = vmul.f32 %v772_v35, %v1023_v5  ;;  %781 = vrsqrt.f32 %v1067_v37  ;;  %v285_v43 = vsub.f32 %v283_v33, %v1073_v39  ;;  %v288_v44 = vmax.f32 %v286_v34, 0.0 }
  0xf3   : > { %783 = vrsqrt.f32 %v1069_v38  ;;  %v330_v45 = vsel %vm329_vm11, %v1021_v4, %v328_v36  ;;  %v444_v58 = vand.u32 2147483648, %v1069_v38  ;;  %vm441_vm5 = vcmp.eq.f32.partialorder %v1069_v38, inf }
  0xf4   : > { %v774_v47 = vpop.eup %773  ;;  %v287_v48 = vadd.f32 1.0, %v285_v43  ;;  %v292_v49 = vsel %vm291_vm6, %v288_v44, 0.0  ;;  %v323_v50 = vsel %vm322_vm9, %v1023_v5, %v321_v42  ;;  %v333_v51 = vsel %vm331_vm12, %v332_v28, %v330_v45 }
  0xf5   : > { %v776_v52 = vpop.eup %775  ;;  %v377_v53 = vmul.f32 %v774_v47, %v1029_v12  ;;  %v1096_v54 = vpop.xlane.xlu1 %483  ;;  %v326_v56 = vsel %vm324_vm10, %v325_v20, %v323_v50  ;;  %v335_v57 = vsub.f32 %v333_v51, %v1073_v39  ;;  %vm448_vm7 = vcmp.eq.f32.partialorder %v1067_v37, inf }
  0xf6   : > { %v1098_v55 = vpop.xlane.xlu0 %481  ;;  %v370_v59 = vmul.f32 %v776_v52, %v1031_v13  ;;  %785 = vrsqrt.f32 %v1096_v54  ;;  %v289_v60 = vmax.f32 %v287_v48, 0.0  ;;  %v334_v61 = vsub.f32 %v326_v56, %v1047_v25 }
  0xf7   : > { %787 = vrsqrt.f32 %v1098_v55  ;;  %v337_v62 = vadd.f32 1.0, %v335_v57  ;;  %v379_v63 = vsel %vm378_vm14, %v1029_v12, %v377_v53  ;;  %vm443_vm8 = vcmp.eq.f32.partialorder %v1069_v38, 0.0 }
  0xf8   : > { %v778_v0 = vpop.eup %777  ;;  %v293_v1 = vsel %vm291_vm6, %v289_v60, 0.0  ;;  %v336_v2 = vadd.f32 1.0, %v334_v61  ;;  %v372_v3 = vsel %vm371_vm13, %v1031_v13, %v370_v59  ;;  %v382_v4 = vsel %vm380_vm0, %v381_v40, %v379_v63 }
  0xf9   : > { %v780_v5 = vpop.eup %779  ;;  %v423_v6 = vmul.f32 %v778_v0, %v1042_v23  ;;  %v1121_v7 = vpop.xlane.xlu1 %529  ;;  %v294_v9 = vadd.f32 %v293_v1, %v292_v49  ;;  %v339_v10 = vmax.f32 %v337_v62, 0.0  ;;  %v375_v11 = vsel %vm373_vm15, %v374_v30, %v372_v3 }
  0xfa   : > { %v1123_v8 = vpop.xlane.xlu0 %527  ;;  %v416_v14 = vmul.f32 %v780_v5, %v1044_v24  ;;  %789 = vrsqrt.f32 %v1121_v7  ;;  %v338_v12 = vmax.f32 %v336_v2, 0.0  ;;  %v383_v15 = vsub.f32 %v375_v11, %v1047_v25 }
  0xfb   : > { %791 = vrsqrt.f32 %v1123_v8  ;;  %295 = vadd.xlane.f32.xlu0 %v294_v9  ;;  %v342_v16 = vsel %vm291_vm6, %v339_v10, 0.0  ;;  %v384_v17 = vsub.f32 %v382_v4, %v1073_v39  ;;  %v425_v18 = vsel %vm424_vm1, %v1042_v23, %v423_v6 }
  0xfc   : > { %v782_v13 = vpop.eup %781  ;;  %v341_v19 = vsel %vm291_vm6, %v338_v12, 0.0  ;;  %v385_v20 = vadd.f32 1.0, %v383_v15  ;;  %v418_v21 = vsel %vm417_vm2, %v1044_v24, %v416_v14  ;;  %v428_v22 = vsel %vm426_vm3, %v427_v46, %v425_v18 }
  0xfd   : > { %v784_v25 = vpop.eup %783  ;;  %v447_v26 = vmul.f32 %v782_v13, %v1067_v37  ;;  %v1143_v27 = vpop.xlane.xlu1 %553  ;;  %v343_v29 = vadd.f32 %v342_v16, %v341_v19  ;;  %v386_v30 = vadd.f32 1.0, %v384_v17  ;;  %v421_v31 = vsel %vm419_vm4, %v420_v41, %v418_v21 }
  0xfe   : > { %v1145_v28 = vpop.xlane.xlu0 %551  ;;  %v440_v32 = vmul.f32 %v784_v25, %v1069_v38  ;;  %793 = vrsqrt.f32 %v1143_v27  ;;  %v387_v23 = vmax.f32 %v385_v20, 0.0  ;;  %vm450_vm9 = vcmp.eq.f32.partialorder %v1067_v37, 0.0 }
  0xff   : > { %795 = vrsqrt.f32 %v1145_v28  ;;  %344 = vadd.xlane.f32.xlu1 %v343_v29  ;;  %v388_v33 = vmax.f32 %v386_v30, 0.0  ;;  %v449_v34 = vsel %vm448_vm7, %v1067_v37, %v447_v26  ;;  %v451_v35 = vand.u32 2147483648, %v1067_v37 }
 0x100   : > { %v786_v36 = vpop.eup %785  ;;  %v390_v24 = vsel %vm291_vm6, %v387_v23, 0.0  ;;  %v442_v39 = vsel %vm441_vm5, %v1069_v38, %v440_v32  ;;  %vm487_vm10 = vcmp.eq.f32.partialorder %v1098_v55, inf  ;;  %vm489_vm11 = vcmp.eq.f32.partialorder %v1098_v55, 0.0 }
 0x101   : > { %v788_v40 = vpop.eup %787  ;;  %v493_v41 = vmul.f32 %v786_v36, %v1096_v54  ;;  %v391_v42 = vsel %vm291_vm6, %v388_v33, 0.0  ;;  %v445_v43 = vsel %vm443_vm8, %v444_v58, %v442_v39  ;;  %v452_v37 = vsel %vm450_vm9, %v451_v35, %v449_v34 }
 0x102   : > { %v486_v44 = vmul.f32 %v788_v40, %v1098_v55  ;;  %v392_v45 = vadd.f32 %v391_v42, %v390_v24  ;;  %v453_v46 = vsub.f32 %v445_v43, %v421_v31  ;;  %v454_v47 = vsub.f32 %v452_v37, %v428_v22 }
 0x103   : > { %v490_v48 = vand.u32 2147483648, %v1098_v55  ;;  %vm494_vm12 = vcmp.eq.f32.partialorder %v1096_v54, inf  ;;  %vm496_vm13 = vcmp.eq.f32.partialorder %v1096_v54, 0.0  ;;  %v497_v49 = vand.u32 2147483648, %v1096_v54 }
 0x104   : > { %v790_v50 = vpop.eup %789  ;;  %393 = vadd.xlane.f32.xlu0 %v392_v45  ;;  %v455_v51 = vadd.f32 1.0, %v453_v46  ;;  %v456_v52 = vadd.f32 1.0, %v454_v47  ;;  %v488_v38 = vsel %vm487_vm10, %v1098_v55, %v486_v44  ;;  %v495_v53 = vsel %vm494_vm12, %v1096_v54, %v493_v41 }
 0x105   : > { %v792_v56 = vpop.eup %791  ;;  %v491_v57 = vsel %vm489_vm11, %v490_v48, %v488_v38  ;;  %v498_v58 = vsel %vm496_vm13, %v497_v49, %v495_v53  ;;  %v539_v63 = vmul.f32 %v790_v50, %v1121_v7  ;;  %vm533_vm14 = vcmp.eq.f32.partialorder %v1123_v8, inf }
 0x106   : > { %v532_v59 = vmul.f32 %v792_v56, %v1123_v8  ;;  %v457_v60 = vmax.f32 %v455_v51, 0.0  ;;  %v458_v61 = vmax.f32 %v456_v52, 0.0  ;;  %v499_v62 = vsub.f32 %v491_v57, %v421_v31 }
 0x107   : > { %v500_v0 = vsub.f32 %v498_v58, %v428_v22  ;;  %v536_v10 = vand.u32 2147483648, %v1123_v8  ;;  %vm535_vm15 = vcmp.eq.f32.partialorder %v1123_v8, 0.0  ;;  %vm540_vm0 = vcmp.eq.f32.partialorder %v1121_v7, inf }
 0x108   : > { %v794_v1 = vpop.eup %793  ;;  %v460_v2 = vsel %vm291_vm6, %v457_v60, 0.0  ;;  %v461_v54 = vsel %vm291_vm6, %v458_v61, 0.0  ;;  %v501_v3 = vadd.f32 1.0, %v499_v62  ;;  %v534_v55 = vsel %vm533_vm14, %v1123_v8, %v532_v59 }
 0x109   : > { %v796_v4 = vpop.eup %795  ;;  %v563_v5 = vmul.f32 %v794_v1, %v1143_v27  ;;  %v462_v6 = vadd.f32 %v461_v54, %v460_v2  ;;  %v502_v9 = vadd.f32 1.0, %v500_v0  ;;  %v537_v15 = vsel %vm535_vm15, %v536_v10, %v534_v55 }
 0x10a   : > { %v556_v11 = vmul.f32 %v796_v4, %v1145_v28  ;;  %v503_v14 = vmax.f32 %v501_v3, 0.0  ;;  %vm557_vm1 = vcmp.eq.f32.partialorder %v1145_v28, inf  ;;  %v560_v18 = vand.u32 2147483648, %v1145_v28 }
 0x10b   : > { %463 = vadd.xlane.f32.xlu1 %v462_v6  ;;  %v504_v12 = vmax.f32 %v502_v9, 0.0  ;;  %vm564_vm2 = vcmp.eq.f32.partialorder %v1143_v27, inf  ;;  %v541_v19 = vsel %vm540_vm0, %v1121_v7, %v539_v63  ;;  %vm559_vm3 = vcmp.eq.f32.partialorder %v1145_v28, 0.0 }
 0x10c   : > { %v506_v16 = vsel %vm291_vm6, %v503_v14, 0.0  ;;  %v558_v17 = vsel %vm557_vm1, %v1145_v28, %v556_v11  ;;  %v565_v8 = vsel %vm564_vm2, %v1143_v27, %v563_v5  ;;  %v543_v21 = vand.u32 2147483648, %v1121_v7 }
 0x10d   : > { %v507_v13 = vsel %vm291_vm6, %v504_v12, 0.0  ;;  %v561_v22 = vsel %vm559_vm3, %v560_v18, %v558_v17  ;;  %v567_v25 = vand.u32 2147483648, %v1143_v27  ;;  %vm542_vm4 = vcmp.eq.f32.partialorder %v1121_v7, 0.0 }
 0x10e   : > { %v508_v20 = vadd.f32 %v507_v13, %v506_v16  ;;  %vm566_vm5 = vcmp.eq.f32.partialorder %v1143_v27, 0.0  ;;  %v569_v26 = vsub.f32 %v561_v22, %v537_v15  ;;  %v544_v29 = vsel %vm542_vm4, %v543_v21, %v541_v19 }
 0x10f   : > { %v568_v30 = vsel %vm566_vm5, %v567_v25, %v565_v8  ;;  %v229_v15 = vlaneseq }
 0x110   : > { %509 = vadd.xlane.f32.xlu0 %v508_v20  ;;  %v570_v31 = vsub.f32 %v568_v30, %v544_v29  ;;  %v571_v32 = vadd.f32 1.0, %v569_v26 }
 0x111   : > { %v230_v16 = vand.u32 127, %v229_v15 }
 0x112   : > { %v572_v23 = vadd.f32 1.0, %v570_v31  ;;  %v573_v28 = vmax.f32 %v571_v32, 0.0 }
 0x113   : > { %vm290_vm7 = vcmp.eq.s32.totalorder %v230_v16, 0  ;;  %vm389_vm8 = vcmp.eq.s32.totalorder %v230_v16, 2  ;;  %vm459_vm9 = vcmp.eq.s32.totalorder %v230_v16, 3  ;;  %vm505_vm10 = vcmp.eq.s32.totalorder %v230_v16, 4 }
 0x114   : > { %v574_v33 = vmax.f32 %v572_v23, 0.0  ;;  %v576_v34 = vsel %vm291_vm6, %v573_v28, 0.0  ;;  %vm575_vm11 = vcmp.eq.s32.totalorder %v230_v16, 5 }
 0x116   : > { %v577_v35 = vsel %vm291_vm6, %v574_v33, 0.0  ;;  %vm340_vm6 = vcmp.eq.s32.totalorder %v230_v16, 1 }
 0x117   : > { %v578_v36 = vadd.f32 %v577_v35, %v576_v34 }
 0x119   : > { %579 = vadd.xlane.f32.xlu1 %v578_v36 }
 0x188   : > { %v296_v24 = vpop.xlane.xlu0 %295 }
 0x189   : > { %v297_v39 = vrot.slane %v296_v24, 4 }
 0x18b   : > { %v298_v7 = vadd.f32 %v297_v39, %v296_v24 }
 0x18c   : > { %v345_v40 = vpop.xlane.xlu1 %344 }
 0x18d   : > { %v299_v27 = vrot.slane %v298_v7, 2  ;;  %v346_v41 = vrot.slane %v345_v40, 4 }
 0x18f   : > { %v347_v42 = vadd.f32 %v346_v41, %v345_v40  ;;  %v300_v43 = vadd.f32 %v299_v27, %v298_v7 }
 0x191   : > { %v348_v37 = vrot.slane %v347_v42, 2  ;;  %v394_v44 = vpop.xlane.xlu0 %393  ;;  %v301_v45 = vrot.slane %v300_v43, 1 }
 0x192   : > { %v395_v46 = vrot.slane %v394_v44, 4 }
 0x193   : > { %v302_v47 = vadd.f32 %v301_v45, %v300_v43  ;;  %v349_v48 = vadd.f32 %v348_v37, %v347_v42 }
 0x194   : > { %v396_v49 = vadd.f32 %v395_v46, %v394_v44 }
 0x195   : > { %698 = vpush %v302_v47  ;;  %v350_v50 = vrot.slane %v349_v48, 1 }
 0x196   : > { %v397_v51 = vrot.slane %v396_v49, 2 }
 0x197   : > { %v351_v52 = vadd.f32 %v350_v50, %v349_v48 }
 0x198   : > { %v464_v38 = vpop.xlane.xlu1 %463  ;;  %v398_v53 = vadd.f32 %v397_v51, %v396_v49 }
 0x199   : > { %v465_v56 = vrot.slane %v464_v38, 4  ;;  %700 = vpush %v351_v52 }
 0x19a   : > { %v399_v57 = vrot.slane %v398_v53, 1 }
 0x19b   : > { %v466_v58 = vadd.f32 %v465_v56, %v464_v38 }
 0x19c   : > { %v400_v59 = vadd.f32 %v399_v57, %v398_v53 }
 0x19d   : > { %v467_v60 = vrot.slane %v466_v58, 2  ;;  %v510_v61 = vpop.xlane.xlu0 %509 }
 0x19e   : > { %v511_v62 = vrot.slane %v510_v61, 4  ;;  %702 = vpush %v400_v59 }
 0x19f   : > { %v468_v63 = vadd.f32 %v467_v60, %v466_v58 }
 0x1a0   : > { %v512_v0 = vadd.f32 %v511_v62, %v510_v61 }
 0x1a1   : > { %v469_v1 = vrot.slane %v468_v63, 1 }
 0x1a2   : > { %v513_v2 = vrot.slane %v512_v0, 2 }
 0x1a3   : > { %v470_v54 = vadd.f32 %v469_v1, %v468_v63 }
 0x1a4   : > { %v514_v3 = vadd.f32 %v513_v2, %v512_v0 }
 0x1a5   : > { %704 = vpush %v470_v54 }
 0x1a6   : > { %v515_v55 = vrot.slane %v514_v3, 1  ;;  %v580_v4 = vpop.xlane.xlu1 %579 }
 0x1a7   : > { %v581_v5 = vrot.slane %v580_v4, 4 }
 0x1a8   : > { %v516_v6 = vadd.f32 %v515_v55, %v514_v3 }
 0x1a9   : > { %v582_v9 = vadd.f32 %v581_v5, %v580_v4 }
 0x1aa   : > { %706 = vpush %v516_v6 }
 0x1ab   : > { %v583_v10 = vrot.slane %v582_v9, 2 }
 0x1ad   : > { %v584_v11 = vadd.f32 %v583_v10, %v582_v9 }
 0x1af   : > { %v585_v14 = vrot.slane %v584_v11, 1 }
 0x1b1   : > { %v586_v12 = vadd.f32 %v585_v14, %v584_v11 }
 0x1b3   : > { %708 = vpush %v586_v12 }
 0x1c6   : > { %s699_s12 = spop %698 }
 0x1c7   : > { %v304_v18 = vstv %s699_s12 }
 0x1c8   : > { %v305_v20 = vsel %vm290_vm7, %v304_v18, 0.0 }
 0x1ca   : > { %s701_s19 = spop %700 }
 0x1cb   : > { %v353_v17 = vstv %s701_s19 }
 0x1cc   : > { %v354_v19 = vsel %vm340_vm6, %v353_v17, 0.0 }
 0x1cd   : > { %v355_v22 = vadd.f32 %v354_v19, %v305_v20 }
 0x1cf   : > { %s703_s27 = spop %702 }
 0x1d0   : > { %v402_v13 = vstv %s703_s27 }
 0x1d1   : > { %v403_v21 = vsel %vm389_vm8, %v402_v13, 0.0 }
 0x1d2   : > { %v404_v29 = vadd.f32 %v403_v21, %v355_v22 }
 0x1d6   : > { %s705_s29 = spop %704 }
 0x1d7   : > { %v472_v8 = vstv %s705_s29 }
 0x1d8   : > { %v473_v26 = vsel %vm459_vm9, %v472_v8, 0.0 }
 0x1d9   : > { %v474_v31 = vadd.f32 %v473_v26, %v404_v29 }
 0x1db   : > { %s707_s30 = spop %706 }
 0x1dc   : > { %v518_v25 = vstv %s707_s30 }
 0x1dd   : > { %v519_v30 = vsel %vm505_vm10, %v518_v25, 0.0 }
 0x1de   : > { %v520_v32 = vadd.f32 %v519_v30, %v474_v31 }
 0x1e4   : > { %s709_s25 = spop %708 }
 0x1e5   : > { %v588_v23 = vstv %s709_s25 }
 0x1e6   : > { %v589_v28 = vsel %vm575_vm11, %v588_v23, 0.0 }
 0x1e7   : > { %v590_v33 = vadd.f32 %v589_v28, %v520_v32 }
 0x1e9   : > { %591 = vst [vmem:[%s226_s21] sm:$0x1] %v590_v33 }
 0x1ea PF: > { %p15_p6 = scmp.ge.s32.totalorder %s911_s14, 6   ;;  %s1229_s9 = smov %s855_s10 }
 0x1eb   : > { %s1230_s10 = smov %s859_s11  ;;  %s1231_s11 = smov %s921_s17 }
 0x1ec   : > { %s1232_s12 = smov %s911_s14  ;;  %17 = sbr.rel (!%p15_p6) target bundleno = 5 (0x5), region = 89 }
 0x1f3   :  { %609 = vsyncpa [#allocation3], 1 }
 0x1f4   :  { %611 = vsyncpa [#allocation3 + $0x1], 1 }
 0x1f5   :  { %612 = vsyncpa [#allocation5], 1 }
 0x1f6   :  { %614 = vsyncpa [#allocation5 + $0x1], 1 }

</bundles_post_ra>
